<compile_context>
chip_gen: v7x
topology: tpu7x:2x2x1
jax: 0.10.0
libtpu: 0.0.40
codegen_flags: <defaults>
</compile_context>

<pallas_src>
from functools import lru_cache

import jax
import jax.numpy as jnp
from jax.experimental import pallas as pl
from jax.experimental.pallas import tpu as pltpu

_MIB = 1024 * 1024


def d_matrix(n: int) -> jnp.ndarray:
    """First-difference operator D of shape (n-1, n)."""
    d = jnp.zeros((n - 1, n), dtype=jnp.float32)
    d = d.at[:, 1:].add(jnp.eye(n - 1, dtype=jnp.float32))
    d = d.at[:, :-1].add(-jnp.eye(n - 1, dtype=jnp.float32))
    return d


@lru_cache(maxsize=None)
def _hp_inv_padded(n: int, lamb: float, n_pad: int) -> jnp.ndarray:
    """A_inv = (I + lamb * D.T D)^{-1}, symmetrized, zero-padded to (n_pad, n_pad)."""
    d1 = d_matrix(n)                                   # (N-1, N)
    d2 = d_matrix(n - 1)                               # (N-2, N-1)
    d = d2 @ d1                                        # (N-2, N)
    a = jnp.eye(n, dtype=jnp.float32) + lamb * (d.T @ d)
    # TODO(synk): dense matrix inversion has no clean Pallas equivalent; it is
    # data-independent (depends only on N and lamb), so it is computed once in
    # plain JAX and cached.
    a_inv = jnp.linalg.inv(a)
    a_inv = 0.5 * (a_inv + a_inv.T)                    # A is SPD -> A^{-1} symmetric
    if n_pad != n:
        a_inv = jnp.pad(a_inv, ((0, n_pad - n), (0, n_pad - n)))
    return a_inv


def _vmem_capacity_bytes() -> int:
    """Physical per-core VMEM, with a conservative fallback (v7x = 64 MiB)."""
    try:
        return int(pltpu.get_tpu_info().vmem_capacity_bytes)
    except Exception:
        return 64 * _MIB


def _round_up(v: int, m: int) -> int:
    return ((v + m - 1) // m) * m


def _choose_tiles(m_rows: int, n_pad: int, budget: int):
    """Pick (t_m, t_n) so pipeline buffers fit the VMEM budget.

    Per-step VMEM (conservatively assuming double-buffered A_inv):
        2 * n_pad * t_n * 4            (A_inv column panel)
      + 2 * t_m  * n_pad * 4           (x row panel)
      + 2 * t_m  * t_n  * 4            (g output tile)
    """
    # Column tile for A_inv: keep its blocks within half the budget.  Only
    # legal to split when the lane axis is 128-aligned (it is whenever padded).
    if n_pad % 128 == 0 and 2 * n_pad * n_pad * 4 > budget // 2:
        t_n = ((budget // 2) // (2 * n_pad * 4)) // 128 * 128
        t_n = max(128, min(t_n, n_pad))
    else:
        t_n = n_pad
    a_bytes = 2 * n_pad * t_n * 4

    per_row = 8 * (n_pad + t_n)                        # x + g double buffers
    rows = max(8, ((budget - a_bytes) // per_row) // 8 * 8)
    if m_rows >= 16:
        # Keep >= 2 row panels so the "parallel" axis has work for both
        # TensorCores on megacore parts (extra grid step ~0.35 us elsewhere).
        rows = min(rows, _round_up(pl.cdiv(m_rows, 2), 8))
        t_m = max(8, rows)
    else:
        t_m = m_rows if rows >= m_rows else max(8, rows)
    return t_m, t_n


def _hp_kernel(a_ref, x_ref, g_ref):
    # a_ref: (Np, t_n) column panel of the symmetric smoother inverse A_inv.
    # x_ref: (t_m, Np) row panel of X_flat = x.reshape(B*C, N) (zero-padded).
    # g_ref: (t_m, t_n) output tile of G_flat = X_flat @ A_inv.
    g_ref[...] = jnp.dot(
        x_ref[...], a_ref[...],
        preferred_element_type=jnp.float32,
        precision=jax.lax.Precision.HIGHEST,   # exact f32 MXU path (1e-4 tol)
    )


def hp_filter(x: jnp.ndarray, lamb: float):
    """x: (B, C, N) float32. Returns (res, g), each (B, N, C)."""
    B, C, N = x.shape
    M = B * C

    # Lane padding: multiple of 128 when N is large enough to care.  Zero
    # K-columns / output-columns are numerically exact and sliced off after.
    Np = _round_up(N, 128) if N >= 128 else N

    a_inv = _hp_inv_padded(N, float(lamb), Np)            # (Np, Np)
    x_flat = x.reshape(M, N).astype(jnp.float32)          # no input transpose
    if Np != N:
        x_flat = jnp.pad(x_flat, ((0, 0), (0, Np - N)))

    vmem_cap = _vmem_capacity_bytes()
    vmem_limit = max(32 * _MIB, min(int(vmem_cap * 0.75), 100 * _MIB))
    t_m, t_n = _choose_tiles(M, Np, int(vmem_limit * 0.85))
    grid_m = pl.cdiv(M, t_m)
    grid_n = pl.cdiv(Np, t_n)

    flops = 2 * M * Np * Np
    bytes_accessed = 4 * (grid_n * M * Np + Np * Np + M * Np)

    def _run(single_buffer_a: bool):
        a_kwargs = dict(pipeline_mode=pl.Buffered(1)) if single_buffer_a else {}
        return pl.pallas_call(
            _hp_kernel,
            out_shape=jax.ShapeDtypeStruct((M, Np), jnp.float32),
            grid_spec=pl.GridSpec(
                grid=(grid_m, grid_n),
                in_specs=[
                    # A_inv column panel; block index constant in i.
                    pl.BlockSpec((Np, t_n), lambda i, j: (0, j), **a_kwargs),
                    # X row panel; block index constant in j (no re-DMA per j).
                    pl.BlockSpec((t_m, Np), lambda i, j: (i, 0)),
                ],
                out_specs=pl.BlockSpec((t_m, t_n), lambda i, j: (i, j)),
            ),
            compiler_params=pltpu.CompilerParams(
                dimension_semantics=("parallel", "parallel"),
                vmem_limit_bytes=int(vmem_limit),
            ),
            cost_estimate=pl.CostEstimate(
                flops=flops, transcendentals=0, bytes_accessed=bytes_accessed),
        )(a_inv, x_flat)

    if grid_n == 1:
        # A_inv's block index never changes -> a single VMEM buffer suffices
        # (saves Np^2*4 bytes; a quarter of v7x's 64 MiB VMEM at N=2048).
        try:
            g_flat = _run(single_buffer_a=True)
        except Exception:
            # Fall back to default double buffering if single-buffer pipeline
            # mode is unsupported by this jax version.
            g_flat = _run(single_buffer_a=False)
    else:
        g_flat = _run(single_buffer_a=False)

    if Np != N:
        g_flat = g_flat[:, :N]

    # Relayout to (B, N, C); res = x_bnc - g_bnc fuses with the transposes in
    # XLA (kernel stores only g -> ~half the kernel HBM write traffic).
    # No input_output_aliases: x is reused here for the residual.
    g = jnp.transpose(g_flat.reshape(B, C, N), (0, 2, 1))
    res = jnp.transpose(x.astype(jnp.float32), (0, 2, 1)) - g
    return res, g


if __name__ == "__main__":
    # Small deterministic example consistent with the module's forward:
    # batch=2, channels(features)=4, sequence length N=16.
    key = jax.random.PRNGKey(0)
    B, C, N = 2, 4, 16
    lamb = 10.0

    x = jax.random.normal(key, (B, C, N), dtype=jnp.float32)

    res, g = hp_filter(x, lamb)
    res = jax.block_until_ready(res)
    g = jax.block_until_ready(g)

    # Pure-JAX reference (same math as the PyTorch module, no Pallas).
    x_bnc = jnp.transpose(x, (0, 2, 1))
    d = d_matrix(N - 1) @ d_matrix(N)
    a_inv_ref = jnp.linalg.inv(jnp.eye(N, dtype=jnp.float32) + lamb * (d.T @ d))
    g_ref = jnp.einsum("ij,bjc->bic", a_inv_ref, x_bnc,
                       precision=jax.lax.Precision.HIGHEST)
    res_ref = x_bnc - g_ref
    assert jnp.allclose(g, g_ref, atol=1e-4, rtol=1e-4)
    assert jnp.allclose(res, res_ref, atol=1e-4, rtol=1e-4)

    print("KERNEL_OK")
</pallas_src>

<mosaic_0001>
module attributes {stable_mosaic.version = 11 : i64} {
  func.func @_hp_kernel(%arg0: i32, %arg1: i32, %arg2: memref<16x16xf32, #tpu.memory_space<vmem>>, %arg3: memref<8x16xf32, #tpu.memory_space<vmem>>, %arg4: memref<8x16xf32, #tpu.memory_space<vmem>>) attributes {dimension_semantics = [#tpu.dimension_semantics<parallel>, #tpu.dimension_semantics<parallel>], iteration_bounds = array<i64: 1, 1>, scalar_prefetch = 0 : i64, scratch_operands = 0 : i64, tpu.core_type = #tpu.core_type<tc>, window_params = [{pipeline_mode = #tpu.pipeline_mode<synchronous>, transform_indices = @transform_0, window_bounds = array<i64: 16, 16>}, {transform_indices = @transform_1, window_bounds = array<i64: 8, 16>}, {transform_indices = @transform_2, window_bounds = array<i64: 8, 16>}]} {
    %c0 = arith.constant 0 : index
    %c0_0 = arith.constant 0 : index
    %0 = vector.load %arg3[%c0, %c0_0] : memref<8x16xf32, #tpu.memory_space<vmem>>, vector<8x16xf32>
    %c0_1 = arith.constant 0 : index
    %c0_2 = arith.constant 0 : index
    %1 = vector.load %arg2[%c0_1, %c0_2] : memref<16x16xf32, #tpu.memory_space<vmem>>, vector<16x16xf32>
    %cst = arith.constant dense<0.000000e+00> : vector<8x16xf32>
    %2 = tpu.matmul %0, %1, %cst {dimension_numbers = #tpu.dot_dimension_numbers<[1], [0], [0], [1], [0, 0, 1, 1], [], []>, precision = #tpu.contract_precision<fp32>} : vector<8x16xf32>, vector<16x16xf32>, vector<8x16xf32> -> vector<8x16xf32>
    %c0_3 = arith.constant 0 : index
    %c0_4 = arith.constant 0 : index
    %3 = vector.load %arg4[%c0_3, %c0_4] : memref<8x16xf32, #tpu.memory_space<vmem>>, vector<8x16xf32>
    tpu.vector_store %arg4[%c0_3, %c0_4], %2 {strides = array<i32>} : memref<8x16xf32, #tpu.memory_space<vmem>>, vector<8x16xf32>,
    return
  }
  func.func @transform_0(%arg0: i32, %arg1: i32) -> (i32, i32) {
    %c0_i32 = arith.constant 0 : i32
    %c0_i32_0 = arith.constant 0 : i32
    return %c0_i32, %arg1 : i32, i32
  }
  func.func @transform_1(%arg0: i32, %arg1: i32) -> (i32, i32) {
    %c0_i32 = arith.constant 0 : i32
    %c0_i32_0 = arith.constant 0 : i32
    return %arg0, %c0_i32 : i32, i32
  }
  func.func @transform_2(%arg0: i32, %arg1: i32) -> (i32, i32) {
    %c0_i32 = arith.constant 0 : i32
    return %arg0, %arg1 : i32, i32
  }
}

module attributes {stable_mosaic.version = 11 : i64} {
  func.func @_hp_kernel(%arg0: i32, %arg1: i32, %arg2: memref<16x16xf32, #tpu.memory_space<vmem>>, %arg3: memref<8x16xf32, #tpu.memory_space<vmem>>, %arg4: memref<8x16xf32, #tpu.memory_space<vmem>>) attributes {dimension_semantics = [#tpu.dimension_semantics<parallel>, #tpu.dimension_semantics<parallel>], iteration_bounds = array<i64: 1, 1>, scalar_prefetch = 0 : i64, scratch_operands = 0 : i64, tpu.core_type = #tpu.core_type<tc>, window_params = [{transform_indices = @transform_0, window_bounds = array<i64: 16, 16>}, {transform_indices = @transform_1, window_bounds = array<i64: 8, 16>}, {transform_indices = @transform_2, window_bounds = array<i64: 8, 16>}]} {
    %c0 = arith.constant 0 : index
    %c0_0 = arith.constant 0 : index
    %0 = vector.load %arg3[%c0, %c0_0] : memref<8x16xf32, #tpu.memory_space<vmem>>, vector<8x16xf32>
    %c0_1 = arith.constant 0 : index
    %c0_2 = arith.constant 0 : index
    %1 = vector.load %arg2[%c0_1, %c0_2] : memref<16x16xf32, #tpu.memory_space<vmem>>, vector<16x16xf32>
    %cst = arith.constant dense<0.000000e+00> : vector<8x16xf32>
    %2 = tpu.matmul %0, %1, %cst {dimension_numbers = #tpu.dot_dimension_numbers<[1], [0], [0], [1], [0, 0, 1, 1], [], []>, precision = #tpu.contract_precision<fp32>} : vector<8x16xf32>, vector<16x16xf32>, vector<8x16xf32> -> vector<8x16xf32>
    %c0_3 = arith.constant 0 : index
    %c0_4 = arith.constant 0 : index
    %3 = vector.load %arg4[%c0_3, %c0_4] : memref<8x16xf32, #tpu.memory_space<vmem>>, vector<8x16xf32>
    tpu.vector_store %arg4[%c0_3, %c0_4], %2 {strides = array<i32>} : memref<8x16xf32, #tpu.memory_space<vmem>>, vector<8x16xf32>,
    return
  }
  func.func @transform_0(%arg0: i32, %arg1: i32) -> (i32, i32) {
    %c0_i32 = arith.constant 0 : i32
    %c0_i32_0 = arith.constant 0 : i32
    return %c0_i32, %arg1 : i32, i32
  }
  func.func @transform_1(%arg0: i32, %arg1: i32) -> (i32, i32) {
    %c0_i32 = arith.constant 0 : i32
    %c0_i32_0 = arith.constant 0 : i32
    return %arg0, %c0_i32 : i32, i32
  }
  func.func @transform_2(%arg0: i32, %arg1: i32) -> (i32, i32) {
    %c0_i32 = arith.constant 0 : i32
    return %arg0, %arg1 : i32, i32
  }
}

</mosaic_0001>

<bundles_post_ra>
// kernel: tpu_custom_call.1
= control target key start
LH: loop header
LB: loop body
LE: loop exit
PB: predicated region body
PF: predicated region fallthrough
CT: control target
= control target key end

     0   :  { %7 = vsyncpa [#allocation3], 0  ;;  %s755_s0 = inlined_call_operand.hbm [shape: f32[16,16], index: 0, kind: input, shape index: {}]   ;;  %s756_s1 = inlined_call_operand.hbm [shape: f32[8,16], index: 1, kind: input, shape index: {}]   ;;  %s757_s2 = inlined_call_operand.hbm [shape: f32[8,16], index: 2, kind: output, shape index: {}]  }
   0x1   :  { %8 = vsyncpa [#allocation6], 0 }
   0x2   :  { %9 = vsyncpa [#allocation4], 0  ;;  %s688_s9 = smov [#allocation2]   ;;  %s616_s13 = scalar_lea.hbm %s755_s0, 256 }
   0x3   :  { %s15_s10 = sshll.u32 %s688_s9, 4  ;;  %p617_p0 = scmp.ne.s32.totalorder %s755_s0, %s616_s13  ;;  %s16_s10 = int_to_ptr.vmem [resolvable:$true] %s15_s10 }
   0x4   :  { %p620_p1 = scmp.lt.u32.totalorder %s616_s13, %s755_s0 }
   0x6   :  { %p622_p2 = pnand %p620_p1, %p617_p0 }
   0x8   :  { %625 = shalt.err (!%p622_p2)
}
   0x9   :  { %s626_s18 = scalar_lea.vmem %s16_s10, 256  ;;  %p631_p4 = scmp.lt.s32.totalorder %s16_s10, %s16_s10 }
   0xa   :  { %p627_p3 = scmp.ne.s32.totalorder %s16_s10, %s626_s18  ;;  %p632_p5 = scmp.lt.s32.totalorder %s626_s18, %s626_s18 }
   0xc   :  { %p633_p6 = por %p632_p5, %p631_p4 }
   0xe   :  { %p634_p7 = pnand %p633_p6, %p627_p3 }
  0x10   :  { %637 = shalt.err (!%p634_p7)
}
  0x11   :  { %s689_s19 = smov 128   ;;  %s690_s20 = smov 8  }
  0x12   :  { %21 = dma.hbm_to_vmem [thread:$0]  %s755_s0, 256, %s16_s10, [#allocation3], %s689_s19, %s689_s19, %s690_s20  }
  0x13   :  { %s691_s23 = smov [#allocation5]   ;;  %s638_s27 = scalar_lea.hbm %s756_s1, 128 }
  0x14   :  { %s28_s24 = sshll.u32 %s691_s23, 4  ;;  %p639_p8 = scmp.ne.s32.totalorder %s756_s1, %s638_s27  ;;  %s29_s24 = int_to_ptr.vmem [resolvable:$true] %s28_s24 }
  0x15   :  { %p642_p9 = scmp.lt.u32.totalorder %s638_s27, %s756_s1 }
  0x17   :  { %p644_p10 = pnand %p642_p9, %p639_p8 }
  0x19   :  { %647 = shalt.err (!%p644_p10)
}
  0x1a   :  { %s648_s4 = scalar_lea.vmem %s29_s24, 128  ;;  %p653_p12 = scmp.lt.s32.totalorder %s29_s24, %s29_s24 }
  0x1b   :  { %p649_p11 = scmp.ne.s32.totalorder %s29_s24, %s648_s4  ;;  %p654_p13 = scmp.lt.s32.totalorder %s648_s4, %s648_s4 }
  0x1d   :  { %p655_p0 = por %p654_p13, %p653_p12 }
  0x1f   :  { %p656_p1 = pnand %p655_p0, %p649_p11 }
  0x21   :  { %659 = shalt.err (!%p656_p1)
}
  0x22   :  { %31 = dma.hbm_to_vmem [thread:$0]  %s756_s1, 128, %s29_s24, [#allocation6]  }
  0x23   :  { %682 = dma.done.wait [#allocation3], 256  }
  0x24   :  { %683 = vsyncadd [#allocation3], 4294967040 }
  0x25   :  { %684 = dma.done.wait [#allocation6], 128  }
  0x26   :  { %685 = vsyncadd [#allocation6], 4294967168  ;;  %v692_v0 = vmov 0.0|0.0   ;;  %vm693_vm0 = vmmov 0   ;;  %v694_v1 = vmov 0.0   ;;  %vm41_vm1 = vcmask 130048  }
  0x27   :  { %590 = vmatprep.subr.bf16.mxu0 %v692_v0  ;;  %564 = vmatprep.mubr.msk.f32.mxu0 %vm693_vm0, %v694_v1  ;;  %v39_v2 = vld [vmem:[#allocation2] sm:$0xff]  ;;  %v40_v3 = vld [vmem:[#allocation2 + $0x8] sm:$0xff]  ;;  %v38_v4 = vld [vmem:[#allocation5] sm:$0xff]  ;;  %s695_s1 = smov [#allocation7]  }
  0x28   :  { %581 = vmatprep.subr.bf16.mxu1 %v692_v0  ;;  %543 = vmatprep.mubr.msk.f32.mxu1 %vm693_vm0, %v694_v1  ;;  %v46_v5 = vand.u32 4294901760, %v39_v2  ;;  %v49_v6 = vand.u32 4294901760, %v40_v3  ;;  %v43_v7 = vsel %vm41_vm1, %v38_v4, 0  ;;  %s511_s6 = sshll.u32 %s695_s1, 4  ;;  %s512_s6 = int_to_ptr.vmem [resolvable:$true] %s511_s6 }
  0x29   :  { %v112_v8 = vand.u32 4294901760, %v43_v7  ;;  %s660_s7 = scalar_lea.vmem %s512_s6, 128  ;;  %p665_p3 = scmp.lt.s32.totalorder %s512_s6, %s512_s6 }
  0x2a   :  { %v582_v9 = vpack.c.bf16 %v49_v6, %v46_v5  ;;  %v124_v10 = vsub.f32 %v39_v2, %v46_v5  ;;  %v131_v11 = vsub.f32 %v40_v3, %v49_v6  ;;  %p661_p2 = scmp.ne.s32.totalorder %s512_s6, %s660_s7  ;;  %p666_p4 = scmp.lt.s32.totalorder %s660_s7, %s660_s7 }
  0x2b   :  { %v113_v12 = vsub.f32 %v43_v7, %v112_v8 }
  0x2c   :  { %592 = vmatpush3.bf16.msra.mxu0 %v582_v9  ;;  %583 = vmatpush3.bf16.msra.mxu1 %v582_v9  ;;  %v125_v13 = vand.u32 4294901760, %v124_v10  ;;  %v132_v14 = vand.u32 4294901760, %v131_v11  ;;  %v588_v24 = vpack.c.bf16 %v131_v11, %v124_v10  ;;  %p667_p5 = por %p666_p4, %p665_p3 }
  0x2d   :  { %v114_v15 = vand.u32 4294901760, %v113_v12  ;;  %584 = vmatprep.subr.bf16.mxu1 %v692_v0  ;;  %593 = vmatprep.subr.bf16.mxu0 %v692_v0 }
  0x2e   :  { %v126_v16 = vsub.f32 %v124_v10, %v125_v13  ;;  %v133_v17 = vsub.f32 %v131_v11, %v132_v14  ;;  %v594_v18 = vpack.c.bf16 %v132_v14, %v125_v13  ;;  %p668_p6 = pnand %p667_p5, %p661_p2 }
  0x2f   :  { %565 = vmatmul.mubr.f32.vlgmr.msra.gmra.mrb[0].mxu0 %v114_v15  ;;  %v115_v19 = vsub.f32 %v113_v12, %v114_v15 }
  0x30   :  { %v127_v20 = vand.u32 4294901760, %v126_v16  ;;  %v134_v21 = vand.u32 4294901760, %v133_v17  ;;  %595 = vmatpush3.bf16.msra.mxu0 %v594_v18  ;;  %571 = vmatprep.mubr.msk.f32.mxu0 %vm693_vm0, %v694_v1 }
  0x31   :  { %v116_v22 = vand.u32 4294901760, %v115_v19  ;;  %596 = vmatprep.subr.bf16.mxu0 %v692_v0 }
  0x32   :  { %v585_v23 = vpack.c.bf16 %v134_v21, %v127_v20 }
  0x33   :  { %544 = vmatmul.mubr.f32.vlgmr.msra.gmra.mrb[0].mxu1 %v116_v22 }
  0x34   :  { %586 = vmatpush3.bf16.msra.mxu1 %v585_v23  ;;  %550 = vmatprep.mubr.msk.f32.mxu1 %vm693_vm0, %v694_v1 }
  0x35   :  { %587 = vmatprep.subr.bf16.mxu1 %v692_v0 }
  0x37   :  { %572 = vmatmul.mubr.f32.vlgmr.msra.gmra.mrb[0].mxu0 %v112_v8 }
  0x38   :  { %598 = vmatpush3.bf16.msra.mxu0 %v582_v9  ;;  %578 = vmatprep.mubr.msk.f32.mxu0 %vm693_vm0, %v694_v1 }
  0x3b   :  { %551 = vmatmul.mubr.f32.vlgmr.msra.gmra.mrb[0].mxu1 %v112_v8 }
  0x3c   :  { %589 = vmatpush3.bf16.msra.mxu1 %v588_v24  ;;  %557 = vmatprep.mubr.msk.f32.mxu1 %vm693_vm0, %v694_v1 }
  0x3f   :  { %579 = vmatmul.mubr.f32.vlgmr.msra.gmra.mrb[0].mxu0 %v112_v8 }
  0x43   :  { %558 = vmatmul.mubr.f32.vlgmr.msra.gmra.mrb[0].mxu1 %v113_v12 }
 0x112   :  { %v500_v25 = vpop.f32.mrb[0].mxu0 }
 0x113   :  { %v580_v26 = vpop.f32.mrb[1].mxu0 }
 0x116   :  { %v275_v27 = vpop.f32.mrb[0].mxu1 }
 0x117   :  { %v599_v28 = vadd.f32 %v500_v25, %v275_v27  ;;  %v559_v29 = vpop.f32.mrb[1].mxu1 }
 0x119   :  { %504 = vst.msk [vmem:[#allocation7] sm:$0xff] %vm41_vm1, %v599_v28 }
 0x11a   :  { %671 = shalt.err (!%p668_p6)
}
 0x11b   :  { %s672_s10 = scalar_lea.hbm %s757_s2, 128 }
 0x11c   :  { %p673_p7 = scmp.ne.s32.totalorder %s757_s2, %s672_s10  ;;  %p676_p8 = scmp.lt.u32.totalorder %s672_s10, %s757_s2 }
 0x11e   :  { %p678_p9 = pnand %p676_p8, %p673_p7 }
 0x120   :  { %681 = shalt.err (!%p678_p9)
}
 0x121   :  { %514 = dma.vmem_to_hbm [thread:$0]  %s512_s6, 128, %s757_s2, [#allocation4]  }
 0x122   :  { %686 = dma.done.wait [#allocation4], 128  }
 0x123   :  { %687 = vsyncadd [#allocation4], 4294967168 }
 0x124   :  { %518 = vsyncpa [#allocation3], 1 }
 0x125   :  { %519 = vsyncpa [#allocation6], 1 }
 0x126   :  { %520 = vsyncpa [#allocation4], 1 }

// kernel: tpu_custom_call.1
= control target key start
LH: loop header
LB: loop body
LE: loop exit
PB: predicated region body
PF: predicated region fallthrough
CT: control target
= control target key end

     0   :  { %7 = vsyncpa [#allocation3], 0  ;;  %s755_s0 = inlined_call_operand.hbm [shape: f32[16,16], index: 0, kind: input, shape index: {}]   ;;  %s756_s1 = inlined_call_operand.hbm [shape: f32[8,16], index: 1, kind: input, shape index: {}]   ;;  %s757_s2 = inlined_call_operand.hbm [shape: f32[8,16], index: 2, kind: output, shape index: {}]  }
   0x1   :  { %8 = vsyncpa [#allocation6], 0 }
   0x2   :  { %9 = vsyncpa [#allocation4], 0  ;;  %s688_s9 = smov [#allocation2]   ;;  %s616_s13 = scalar_lea.hbm %s755_s0, 256 }
   0x3   :  { %s15_s10 = sshll.u32 %s688_s9, 4  ;;  %p617_p0 = scmp.ne.s32.totalorder %s755_s0, %s616_s13  ;;  %s16_s10 = int_to_ptr.vmem [resolvable:$true] %s15_s10 }
   0x4   :  { %p620_p1 = scmp.lt.u32.totalorder %s616_s13, %s755_s0 }
   0x6   :  { %p622_p2 = pnand %p620_p1, %p617_p0 }
   0x8   :  { %625 = shalt.err (!%p622_p2)
}
   0x9   :  { %s626_s18 = scalar_lea.vmem %s16_s10, 256  ;;  %p631_p4 = scmp.lt.s32.totalorder %s16_s10, %s16_s10 }
   0xa   :  { %p627_p3 = scmp.ne.s32.totalorder %s16_s10, %s626_s18  ;;  %p632_p5 = scmp.lt.s32.totalorder %s626_s18, %s626_s18 }
   0xc   :  { %p633_p6 = por %p632_p5, %p631_p4 }
   0xe   :  { %p634_p7 = pnand %p633_p6, %p627_p3 }
  0x10   :  { %637 = shalt.err (!%p634_p7)
}
  0x11   :  { %s689_s19 = smov 128   ;;  %s690_s20 = smov 8  }
  0x12   :  { %21 = dma.hbm_to_vmem [thread:$0]  %s755_s0, 256, %s16_s10, [#allocation3], %s689_s19, %s689_s19, %s690_s20  }
  0x13   :  { %s691_s23 = smov [#allocation5]   ;;  %s638_s27 = scalar_lea.hbm %s756_s1, 128 }
  0x14   :  { %s28_s24 = sshll.u32 %s691_s23, 4  ;;  %p639_p8 = scmp.ne.s32.totalorder %s756_s1, %s638_s27  ;;  %s29_s24 = int_to_ptr.vmem [resolvable:$true] %s28_s24 }
  0x15   :  { %p642_p9 = scmp.lt.u32.totalorder %s638_s27, %s756_s1 }
  0x17   :  { %p644_p10 = pnand %p642_p9, %p639_p8 }
  0x19   :  { %647 = shalt.err (!%p644_p10)
}
  0x1a   :  { %s648_s4 = scalar_lea.vmem %s29_s24, 128  ;;  %p653_p12 = scmp.lt.s32.totalorder %s29_s24, %s29_s24 }
  0x1b   :  { %p649_p11 = scmp.ne.s32.totalorder %s29_s24, %s648_s4  ;;  %p654_p13 = scmp.lt.s32.totalorder %s648_s4, %s648_s4 }
  0x1d   :  { %p655_p0 = por %p654_p13, %p653_p12 }
  0x1f   :  { %p656_p1 = pnand %p655_p0, %p649_p11 }
  0x21   :  { %659 = shalt.err (!%p656_p1)
}
  0x22   :  { %31 = dma.hbm_to_vmem [thread:$0]  %s756_s1, 128, %s29_s24, [#allocation6]  }
  0x23   :  { %682 = dma.done.wait [#allocation3], 256  }
  0x24   :  { %683 = vsyncadd [#allocation3], 4294967040 }
  0x25   :  { %684 = dma.done.wait [#allocation6], 128  }
  0x26   :  { %685 = vsyncadd [#allocation6], 4294967168  ;;  %v692_v0 = vmov 0.0|0.0   ;;  %vm693_vm0 = vmmov 0   ;;  %v694_v1 = vmov 0.0   ;;  %vm41_vm1 = vcmask 130048  }
  0x27   :  { %590 = vmatprep.subr.bf16.mxu0 %v692_v0  ;;  %564 = vmatprep.mubr.msk.f32.mxu0 %vm693_vm0, %v694_v1  ;;  %v39_v2 = vld [vmem:[#allocation2] sm:$0xff]  ;;  %v40_v3 = vld [vmem:[#allocation2 + $0x8] sm:$0xff]  ;;  %v38_v4 = vld [vmem:[#allocation5] sm:$0xff]  ;;  %s695_s1 = smov [#allocation7]  }
  0x28   :  { %581 = vmatprep.subr.bf16.mxu1 %v692_v0  ;;  %543 = vmatprep.mubr.msk.f32.mxu1 %vm693_vm0, %v694_v1  ;;  %v46_v5 = vand.u32 4294901760, %v39_v2  ;;  %v49_v6 = vand.u32 4294901760, %v40_v3  ;;  %v43_v7 = vsel %vm41_vm1, %v38_v4, 0  ;;  %s511_s6 = sshll.u32 %s695_s1, 4  ;;  %s512_s6 = int_to_ptr.vmem [resolvable:$true] %s511_s6 }
  0x29   :  { %v112_v8 = vand.u32 4294901760, %v43_v7  ;;  %s660_s7 = scalar_lea.vmem %s512_s6, 128  ;;  %p665_p3 = scmp.lt.s32.totalorder %s512_s6, %s512_s6 }
  0x2a   :  { %v582_v9 = vpack.c.bf16 %v49_v6, %v46_v5  ;;  %v124_v10 = vsub.f32 %v39_v2, %v46_v5  ;;  %v131_v11 = vsub.f32 %v40_v3, %v49_v6  ;;  %p661_p2 = scmp.ne.s32.totalorder %s512_s6, %s660_s7  ;;  %p666_p4 = scmp.lt.s32.totalorder %s660_s7, %s660_s7 }
  0x2b   :  { %v113_v12 = vsub.f32 %v43_v7, %v112_v8 }
  0x2c   :  { %592 = vmatpush3.bf16.msra.mxu0 %v582_v9  ;;  %583 = vmatpush3.bf16.msra.mxu1 %v582_v9  ;;  %v125_v13 = vand.u32 4294901760, %v124_v10  ;;  %v132_v14 = vand.u32 4294901760, %v131_v11  ;;  %v588_v24 = vpack.c.bf16 %v131_v11, %v124_v10  ;;  %p667_p5 = por %p666_p4, %p665_p3 }
  0x2d   :  { %v114_v15 = vand.u32 4294901760, %v113_v12  ;;  %584 = vmatprep.subr.bf16.mxu1 %v692_v0  ;;  %593 = vmatprep.subr.bf16.mxu0 %v692_v0 }
  0x2e   :  { %v126_v16 = vsub.f32 %v124_v10, %v125_v13  ;;  %v133_v17 = vsub.f32 %v131_v11, %v132_v14  ;;  %v594_v18 = vpack.c.bf16 %v132_v14, %v125_v13  ;;  %p668_p6 = pnand %p667_p5, %p661_p2 }
  0x2f   :  { %565 = vmatmul.mubr.f32.vlgmr.msra.gmra.mrb[0].mxu0 %v114_v15  ;;  %v115_v19 = vsub.f32 %v113_v12, %v114_v15 }
  0x30   :  { %v127_v20 = vand.u32 4294901760, %v126_v16  ;;  %v134_v21 = vand.u32 4294901760, %v133_v17  ;;  %595 = vmatpush3.bf16.msra.mxu0 %v594_v18  ;;  %571 = vmatprep.mubr.msk.f32.mxu0 %vm693_vm0, %v694_v1 }
  0x31   :  { %v116_v22 = vand.u32 4294901760, %v115_v19  ;;  %596 = vmatprep.subr.bf16.mxu0 %v692_v0 }
  0x32   :  { %v585_v23 = vpack.c.bf16 %v134_v21, %v127_v20 }
  0x33   :  { %544 = vmatmul.mubr.f32.vlgmr.msra.gmra.mrb[0].mxu1 %v116_v22 }
  0x34   :  { %586 = vmatpush3.bf16.msra.mxu1 %v585_v23  ;;  %550 = vmatprep.mubr.msk.f32.mxu1 %vm693_vm0, %v694_v1 }
  0x35   :  { %587 = vmatprep.subr.bf16.mxu1 %v692_v0 }
  0x37   :  { %572 = vmatmul.mubr.f32.vlgmr.msra.gmra.mrb[0].mxu0 %v112_v8 }
  0x38   :  { %598 = vmatpush3.bf16.msra.mxu0 %v582_v9  ;;  %578 = vmatprep.mubr.msk.f32.mxu0 %vm693_vm0, %v694_v1 }
  0x3b   :  { %551 = vmatmul.mubr.f32.vlgmr.msra.gmra.mrb[0].mxu1 %v112_v8 }
  0x3c   :  { %589 = vmatpush3.bf16.msra.mxu1 %v588_v24  ;;  %557 = vmatprep.mubr.msk.f32.mxu1 %vm693_vm0, %v694_v1 }
  0x3f   :  { %579 = vmatmul.mubr.f32.vlgmr.msra.gmra.mrb[0].mxu0 %v112_v8 }
  0x43   :  { %558 = vmatmul.mubr.f32.vlgmr.msra.gmra.mrb[0].mxu1 %v113_v12 }
 0x112   :  { %v500_v25 = vpop.f32.mrb[0].mxu0 }
 0x113   :  { %v580_v26 = vpop.f32.mrb[1].mxu0 }
 0x116   :  { %v275_v27 = vpop.f32.mrb[0].mxu1 }
 0x117   :  { %v599_v28 = vadd.f32 %v500_v25, %v275_v27  ;;  %v559_v29 = vpop.f32.mrb[1].mxu1 }
 0x119   :  { %504 = vst.msk [vmem:[#allocation7] sm:$0xff] %vm41_vm1, %v599_v28 }
 0x11a   :  { %671 = shalt.err (!%p668_p6)
}
 0x11b   :  { %s672_s10 = scalar_lea.hbm %s757_s2, 128 }
 0x11c   :  { %p673_p7 = scmp.ne.s32.totalorder %s757_s2, %s672_s10  ;;  %p676_p8 = scmp.lt.u32.totalorder %s672_s10, %s757_s2 }
 0x11e   :  { %p678_p9 = pnand %p676_p8, %p673_p7 }
 0x120   :  { %681 = shalt.err (!%p678_p9)
}
 0x121   :  { %514 = dma.vmem_to_hbm [thread:$0]  %s512_s6, 128, %s757_s2, [#allocation4]  }
 0x122   :  { %686 = dma.done.wait [#allocation4], 128  }
 0x123   :  { %687 = vsyncadd [#allocation4], 4294967168 }
 0x124   :  { %518 = vsyncpa [#allocation3], 1 }
 0x125   :  { %519 = vsyncpa [#allocation6], 1 }
 0x126   :  { %520 = vsyncpa [#allocation4], 1 }

</bundles_post_ra>
